<compile_context>
chip_gen: v6e
topology: v6e:2x2x1
jax: 0.10.0
libtpu: 0.0.40
codegen_flags: <defaults>
</compile_context>

<pallas_src>
import jax
import jax.numpy as jnp
from jax import lax
from jax.experimental import pallas as pl
from jax.experimental.pallas import tpu as pltpu

# ---- configuration -----------------------------------------------------------
N_NUM = 8                          # n_num_features
CAT_CARDS = [3, 5]                 # cat_cardinalities
D_FLAT = N_NUM + sum(CAT_CARDS)    # 16
D_BLOCK = 32                       # backbone d_block
N_CLASSES = 3                      # n_classes
K = 4                              # ensemble size k
B = 2                              # batch

KD = K * D_BLOCK                   # 128 -> ensemble folded along lanes (one MXU tile)
KO = K * N_CLASSES                 # 12
LANES = 128

# packed-parameter slab row layout (rows x 128 lanes, f32)
R_W1 = 0                           # [  0, 16)  W1 with per-member scale folded in  (D_FLAT, KD)
R_W2 = R_W1 + D_FLAT               # [ 16,144)  block-diagonal W2                   (KD, KD)
R_WO = R_W2 + KD                   # [144,272)  block-diagonal Wout, lane-padded    (KD, 128)
R_B1 = R_WO + KD                   # 272        b1 tiled K times                    (128,)
R_B2 = R_B1 + 1                    # 273        b2 tiled K times                    (128,)
R_BO = R_B2 + 1                    # 274        bout flattened, zero-padded         (128,)
N_ROWS = ((R_BO + 1 + 7) // 8) * 8  # 280, 8-sublane aligned


# ---- Pallas kernel: whole ensemble, one invocation, 3 matmuls ------------------
def tabm_kernel(x_num_ref, x_cat_ref, p_ref, out_ref):
    bb = x_num_ref.shape[0]

    # feature assembly (OneHotEncoding0d + column_stack) inside the kernel
    xn = x_num_ref[...]                                     # (B, N_NUM) f32
    cat = x_cat_ref[...]                                    # (B, 2) int32
    oh0 = (lax.broadcasted_iota(jnp.int32, (bb, CAT_CARDS[0]), 1)
           == cat[:, 0:1]).astype(jnp.float32)              # (B, 3)
    oh1 = (lax.broadcasted_iota(jnp.int32, (bb, CAT_CARDS[1]), 1)
           == cat[:, 1:2]).astype(jnp.float32)              # (B, 5)
    x = jnp.concatenate([xn, oh0, oh1], axis=1)             # (B, D_FLAT)

    # static carves of the packed parameter slab (no runtime cost)
    w1 = p_ref[R_W1:R_W1 + D_FLAT, :]                       # (16, 128)  scale folded in
    w2 = p_ref[R_W2:R_W2 + KD, :]                           # (128, 128) block-diag
    wo = p_ref[R_WO:R_WO + KD, :]                           # (128, 128) block-diag, lane-padded
    b1 = p_ref[R_B1:R_B1 + 1, :]                            # (1, 128)
    b2 = p_ref[R_B2:R_B2 + 1, :]                            # (1, 128)
    bo = p_ref[R_BO:R_BO + 1, :]                            # (1, 128)  (zeros past lane KO)

    # shared MLP over all K members at once (ensemble folded along lanes)
    h = jnp.maximum(jnp.dot(x, w1, preferred_element_type=jnp.float32) + b1, 0.0)
    h = jnp.maximum(jnp.dot(h, w2, preferred_element_type=jnp.float32) + b2, 0.0)

    # NLinear head: one block-diagonal matmul; lanes >= KO are exactly zero
    res = jnp.dot(h, wo, preferred_element_type=jnp.float32) + bo   # (B, 128)
    out_ref[...] = res[:, :KO]                               # (B, K*n_classes)


def tabm_forward(x_num, x_cat, params):
    """x_num: (B, N_NUM) f32, x_cat: (B, 2) int32, params: (N_ROWS, 128) f32.
    Returns (B, K, N_CLASSES) f32 in the PyTorch layout."""
    bb = x_num.shape[0]
    flops = 2 * bb * (D_FLAT * KD + KD * KD + KD * LANES)
    bytes_accessed = 4 * (params.size + x_num.size + x_cat.size + bb * KO)
    out = pl.pallas_call(
        tabm_kernel,
        out_shape=jax.ShapeDtypeStruct((bb, KO), jnp.float32),
        in_specs=[pl.BlockSpec(memory_space=pltpu.MemorySpace.VMEM)] * 3,
        out_specs=pl.BlockSpec(memory_space=pltpu.MemorySpace.VMEM),
        cost_estimate=pl.CostEstimate(flops=flops, transcendentals=0,
                                      bytes_accessed=bytes_accessed),
    )(x_num, x_cat, params)
    # (B, K*d_out) -> (B, K, d_out): contiguous reshape, free.
    return out.reshape(bb, K, N_CLASSES)


# ---- one-time parameter packing (done at model-setup time, outside jit) -------
def pack_params(scale, w1, b1, w2, b2, wout, bout):
    # scale: (K, D_FLAT) +-1; w1: (D_FLAT, D_BLOCK); b1: (D_BLOCK,)
    # w2: (D_BLOCK, D_BLOCK); b2: (D_BLOCK,)
    # wout: (K, D_BLOCK, N_CLASSES); bout: (K, N_CLASSES)
    w1_eff = jnp.concatenate([scale[j][:, None] * w1 for j in range(K)], axis=1)  # (16, 128)
    w2_bd = jnp.zeros((KD, KD), jnp.float32)
    wo_bd = jnp.zeros((KD, LANES), jnp.float32)
    for j in range(K):
        w2_bd = w2_bd.at[j * D_BLOCK:(j + 1) * D_BLOCK,
                         j * D_BLOCK:(j + 1) * D_BLOCK].set(w2)
        wo_bd = wo_bd.at[j * D_BLOCK:(j + 1) * D_BLOCK,
                         j * N_CLASSES:(j + 1) * N_CLASSES].set(wout[j])
    b1k = jnp.tile(b1, K)                                           # (128,)
    b2k = jnp.tile(b2, K)                                           # (128,)
    bok = jnp.zeros((LANES,), jnp.float32).at[:KO].set(bout.reshape(-1))

    p = jnp.zeros((N_ROWS, LANES), jnp.float32)
    p = p.at[R_W1:R_W1 + D_FLAT, :].set(w1_eff)
    p = p.at[R_W2:R_W2 + KD, :].set(w2_bd)
    p = p.at[R_WO:R_WO + KD, :].set(wo_bd)
    p = p.at[R_B1, :].set(b1k)
    p = p.at[R_B2, :].set(b2k)
    p = p.at[R_BO, :].set(bok)
    return p


# ---- pure-JAX reference (mirrors the PyTorch forward) --------------------------
def ref_forward(x_num, x_cat, scale, w1, b1, w2, b2, wout, bout):
    onehots = [jax.nn.one_hot(x_cat[:, i], c, dtype=jnp.float32)
               for i, c in enumerate(CAT_CARDS)]
    x = jnp.concatenate([x_num] + onehots, axis=1)                  # (B, D_FLAT)
    xk = x[:, None, :] * scale[None]                                # (B, K, D_FLAT)
    h = jnp.maximum(jnp.einsum('bkf,fd->bkd', xk, w1) + b1, 0.0)
    h = jnp.maximum(jnp.einsum('bkd,de->bke', h, w2) + b2, 0.0)
    return jnp.einsum('bkd,kdo->bko', h, wout) + bout[None]         # (B, K, N_CLASSES)


if __name__ == "__main__":
    key = jax.random.PRNGKey(0)
    k_in, k_cat, k_s, k_w1, k_b1, k_w2, k_b2, k_wo, k_bo = jax.random.split(key, 9)

    # deterministic example inputs
    x_num = jax.random.normal(k_in, (B, N_NUM), dtype=jnp.float32)
    x_cat = jnp.stack([jax.random.randint(k_cat, (B,), 0, c) for c in CAT_CARDS],
                      axis=1).astype(jnp.int32)                     # (B, 2)

    # deterministic parameters
    scale = jnp.where(jax.random.uniform(k_s, (K, D_FLAT)) < 0.5, -1.0, 1.0
                      ).astype(jnp.float32)                         # random-signs ScaleEnsemble
    w1 = jax.random.normal(k_w1, (D_FLAT, D_BLOCK), jnp.float32) / jnp.sqrt(D_FLAT)
    b1 = jax.random.normal(k_b1, (D_BLOCK,), jnp.float32) * 0.01
    w2 = jax.random.normal(k_w2, (D_BLOCK, D_BLOCK), jnp.float32) / jnp.sqrt(D_BLOCK)
    b2 = jax.random.normal(k_b2, (D_BLOCK,), jnp.float32) * 0.01
    wout = jax.random.normal(k_wo, (K, D_BLOCK, N_CLASSES), jnp.float32) / jnp.sqrt(D_BLOCK)
    bout = jax.random.normal(k_bo, (K, N_CLASSES), jnp.float32) * 0.01

    params = pack_params(scale, w1, b1, w2, b2, wout, bout)         # one-time, outside jit

    out = jax.jit(tabm_forward)(x_num, x_cat, params)
    out = jax.block_until_ready(out)

    expected = ref_forward(x_num, x_cat, scale, w1, b1, w2, b2, wout, bout)
    assert out.shape == (B, K, N_CLASSES), out.shape
    assert jnp.allclose(out, expected, atol=1e-4, rtol=1e-4), (
        "mismatch vs reference", float(jnp.max(jnp.abs(out - expected))))

    print("KERNEL_OK")
</pallas_src>

<mosaic_0001>
module attributes {stable_mosaic.version = 11 : i64} {
  func.func @tabm_kernel(%arg0: memref<2x8xf32, #tpu.memory_space<vmem>>, %arg1: memref<2x2xi32, #tpu.memory_space<vmem>>, %arg2: memref<280x128xf32, #tpu.memory_space<vmem>>, %arg3: memref<2x12xf32, #tpu.memory_space<vmem>>) attributes {dimension_semantics = [], scalar_prefetch = 0 : i64, scratch_operands = 0 : i64, tpu.core_type = #tpu.core_type<tc>} {
    %c0 = arith.constant 0 : index
    %c0_0 = arith.constant 0 : index
    %0 = vector.load %arg0[%c0, %c0_0] : memref<2x8xf32, #tpu.memory_space<vmem>>, vector<2x8xf32>
    %c0_1 = arith.constant 0 : index
    %c0_2 = arith.constant 0 : index
    %1 = vector.load %arg1[%c0_1, %c0_2] : memref<2x2xi32, #tpu.memory_space<vmem>>, vector<2x2xi32>
    %2 = tpu.iota {dimensions = array<i32: 1>} : vector<2x3xi32>
    %3 = vector.extract_strided_slice %1 {offsets = [0, 0], sizes = [2, 1], strides = [1, 1]} : vector<2x2xi32> to vector<2x1xi32>
    %4 = vector.broadcast %3 : vector<2x1xi32> to vector<2x3xi32>
    %5 = arith.cmpi eq, %2, %4 : vector<2x3xi32>
    %6 = arith.extui %5 : vector<2x3xi1> to vector<2x3xi32>
    %7 = arith.sitofp %6 : vector<2x3xi32> to vector<2x3xf32>
    %8 = tpu.iota {dimensions = array<i32: 1>} : vector<2x5xi32>
    %9 = vector.extract_strided_slice %1 {offsets = [0, 1], sizes = [2, 1], strides = [1, 1]} : vector<2x2xi32> to vector<2x1xi32>
    %10 = vector.broadcast %9 : vector<2x1xi32> to vector<2x5xi32>
    %11 = arith.cmpi eq, %8, %10 : vector<2x5xi32>
    %12 = arith.extui %11 : vector<2x5xi1> to vector<2x5xi32>
    %13 = arith.sitofp %12 : vector<2x5xi32> to vector<2x5xf32>
    %14 = tpu.concatenate %0, %7, %13 in 1 : vector<2x8xf32>, vector<2x3xf32>, vector<2x5xf32> -> vector<2x16xf32>
    %c0_3 = arith.constant 0 : index
    %c0_4 = arith.constant 0 : index
    %15 = vector.load %arg2[%c0_3, %c0_4] : memref<280x128xf32, #tpu.memory_space<vmem>>, vector<16x128xf32>
    %c16 = arith.constant 16 : index
    %c0_5 = arith.constant 0 : index
    %16 = vector.load %arg2[%c16, %c0_5] : memref<280x128xf32, #tpu.memory_space<vmem>>, vector<128x128xf32>
    %c144 = arith.constant 144 : index
    %c0_6 = arith.constant 0 : index
    %17 = vector.load %arg2[%c144, %c0_6] : memref<280x128xf32, #tpu.memory_space<vmem>>, vector<128x128xf32>
    %c272 = arith.constant 272 : index
    %c0_7 = arith.constant 0 : index
    %18 = vector.load %arg2[%c272, %c0_7] : memref<280x128xf32, #tpu.memory_space<vmem>>, vector<1x128xf32>
    %c273 = arith.constant 273 : index
    %c0_8 = arith.constant 0 : index
    %19 = vector.load %arg2[%c273, %c0_8] : memref<280x128xf32, #tpu.memory_space<vmem>>, vector<1x128xf32>
    %c274 = arith.constant 274 : index
    %c0_9 = arith.constant 0 : index
    %20 = vector.load %arg2[%c274, %c0_9] : memref<280x128xf32, #tpu.memory_space<vmem>>, vector<1x128xf32>
    %cst = arith.constant dense<0.000000e+00> : vector<2x128xf32>
    %21 = tpu.matmul %14, %15, %cst {dimension_numbers = #tpu.dot_dimension_numbers<[1], [0], [0], [1], [0, 0, 1, 1], [], []>} : vector<2x16xf32>, vector<16x128xf32>, vector<2x128xf32> -> vector<2x128xf32>
    %22 = vector.broadcast %18 : vector<1x128xf32> to vector<2x128xf32>
    %23 = arith.addf %21, %22 : vector<2x128xf32>
    %cst_10 = arith.constant 0.000000e+00 : f32
    %24 = vector.broadcast %cst_10 : f32 to vector<2x128xf32>
    %25 = arith.maximumf %23, %24 : vector<2x128xf32>
    %cst_11 = arith.constant dense<0.000000e+00> : vector<2x128xf32>
    %26 = tpu.matmul %25, %16, %cst_11 {dimension_numbers = #tpu.dot_dimension_numbers<[1], [0], [0], [1], [0, 0, 1, 1], [], []>} : vector<2x128xf32>, vector<128x128xf32>, vector<2x128xf32> -> vector<2x128xf32>
    %27 = vector.broadcast %19 : vector<1x128xf32> to vector<2x128xf32>
    %28 = arith.addf %26, %27 : vector<2x128xf32>
    %cst_12 = arith.constant 0.000000e+00 : f32
    %29 = vector.broadcast %cst_12 : f32 to vector<2x128xf32>
    %30 = arith.maximumf %28, %29 : vector<2x128xf32>
    %cst_13 = arith.constant dense<0.000000e+00> : vector<2x128xf32>
    %31 = tpu.matmul %30, %17, %cst_13 {dimension_numbers = #tpu.dot_dimension_numbers<[1], [0], [0], [1], [0, 0, 1, 1], [], []>} : vector<2x128xf32>, vector<128x128xf32>, vector<2x128xf32> -> vector<2x128xf32>
    %32 = vector.broadcast %20 : vector<1x128xf32> to vector<2x128xf32>
    %33 = arith.addf %31, %32 : vector<2x128xf32>
    %34 = vector.extract_strided_slice %33 {offsets = [0, 0], sizes = [2, 12], strides = [1, 1]} : vector<2x128xf32> to vector<2x12xf32>
    %c0_14 = arith.constant 0 : index
    %c0_15 = arith.constant 0 : index
    %35 = vector.load %arg3[%c0_14, %c0_15] : memref<2x12xf32, #tpu.memory_space<vmem>>, vector<2x12xf32>
    tpu.vector_store %arg3[%c0_14, %c0_15], %34 {strides = array<i32>} : memref<2x12xf32, #tpu.memory_space<vmem>>, vector<2x12xf32>,
    return
  }
}

</mosaic_0001>

<bundles_post_ra>
// kernel: tabm_forward.1
= control target key start
LH: loop header
LB: loop body
LE: loop exit
PB: predicated region body
PF: predicated region fallthrough
CT: control target
= control target key end

     0   :  { %8 = vsyncpa [#allocation3], 0  ;;  %s634_s0 = inlined_call_operand.hbm [shape: f32[2,8], index: 0, kind: input, shape index: {}]   ;;  %s635_s1 = inlined_call_operand.hbm [shape: s32[2,2], index: 1, kind: input, shape index: {}]   ;;  %s636_s2 = inlined_call_operand.hbm [shape: f32[280,128], index: 2, kind: input, shape index: {}]   ;;  %s637_s3 = inlined_call_operand.vmem [shape: f32[2,12], index: 3, kind: output, shape index: {}]  }
   0x1   :  { %9 = vsyncpa [#allocation5], 0  ;;  %s548_s12 = smov [#allocation4]   ;;  %s549_s14 = smov [#allocation2]  }
   0x2   :  { %s26_s13 = sshll.u32 %s548_s12, 4  ;;  %s16_s15 = sshll.u32 %s549_s14, 4  ;;  %s27_s13 = int_to_ptr.vmem [resolvable:$true] %s26_s13  ;;  %s17_s15 = int_to_ptr.vmem [resolvable:$true] %s16_s15 }
   0x3   :  { %s492_s16 = scalar_lea.vmem %s27_s13, 32  ;;  %p497_p1 = scmp.lt.s32.totalorder %s27_s13, %s27_s13 }
   0x4   :  { %p493_p0 = scmp.ne.s32.totalorder %s27_s13, %s492_s16  ;;  %p498_p2 = scmp.lt.s32.totalorder %s492_s16, %s492_s16 }
   0x6   :  { %p499_p3 = por %p498_p2, %p497_p1 }
   0x8   :  { %p500_p4 = pnand %p499_p3, %p493_p0 }
   0xa   :  { %503 = shalt.err (!%p500_p4)
}
   0xb   :  { %29 = dma.hbm_to_vmem [thread:$0]  %s635_s1, 32, %s27_s13, [#allocation5]  }
   0xc   :  { %s512_s19 = scalar_lea.vmem %s17_s15, 32  ;;  %p517_p6 = scmp.lt.s32.totalorder %s17_s15, %s17_s15 }
   0xd   :  { %p513_p5 = scmp.ne.s32.totalorder %s17_s15, %s512_s19  ;;  %p518_p7 = scmp.lt.s32.totalorder %s512_s19, %s512_s19 }
   0xf   :  { %p519_p8 = por %p518_p7, %p517_p6 }
  0x11   :  { %p520_p9 = pnand %p519_p8, %p513_p5 }
  0x13   :  { %523 = shalt.err (!%p520_p9)
}
  0x14   :  { %19 = dma.hbm_to_vmem [thread:$0]  %s634_s0, 32, %s17_s15, [#allocation3]  }
  0x15   :  { %s550_s22 = smov [#allocation6]  }
  0x16   :  { %s35_s23 = sshll.u32 %s550_s22, 4  ;;  %s36_s23 = int_to_ptr.vmem [resolvable:$true] %s35_s23 }
  0x17   :  { %s532_s24 = scalar_lea.vmem %s36_s23, 4480  ;;  %p537_p11 = scmp.lt.s32.totalorder %s36_s23, %s36_s23 }
  0x18   :  { %p533_p10 = scmp.ne.s32.totalorder %s36_s23, %s532_s24  ;;  %p538_p12 = scmp.lt.s32.totalorder %s532_s24, %s532_s24 }
  0x1a   :  { %p539_p13 = por %p538_p12, %p537_p11 }
  0x1c   :  { %p540_p0 = pnand %p539_p13, %p533_p10 }
  0x1e   :  { %543 = shalt.err (!%p540_p0)
}
  0x1f   :  { %s551_s1 = smov 128   ;;  %s552_s25 = smov 8  }
  0x20   :  { %41 = dma.hbm_to_vmem [thread:$0]  %s636_s2, 4480, %s36_s23, [#allocation5], %s551_s1, %s551_s1, %s552_s25  }
  0x21   :  { %544 = dma.done.wait [#allocation3], 32  }
  0x22   :  { %545 = vsyncadd [#allocation3], 4294967264 }
  0x23   :  { %546 = dma.done.wait [#allocation5], 4512  }
  0x24   :  { %547 = vsyncadd [#allocation5], 4294962784  ;;  %v553_v0 = vmov 0   ;;  %v554_v1 = vmov 0.0   ;;  %v52_v2 = vld [vmem:[#allocation4] sm:$0x3]  ;;  %v53_v5 = vlaneseq }
  0x25   :  { %482 = vset.pattern.permute.xlu0 %v553_v0  ;;  %395 = vmatprep.subr.mxu0 %v554_v1  ;;  %v555_v3 = vmov 1   ;;  %v80_v4 = vld [vmem:[#allocation6 + $0x8] sm:$0xff]  ;;  %v79_v6 = vld [vmem:[#allocation6] sm:$0xff]  ;;  %vm556_vm0 = vmmov 0   ;;  %v94_v10 = vld [vmem:[#allocation6 + $0x78] sm:$0xff]  ;;  %s557_s0 = smov 11  }
  0x26   :  { %402 = vmatprep.subr.mxu1 %v554_v1  ;;  %56 = vperm.xlu0 %482, %v52_v2   ;;  %v96_v7 = vld [vmem:[#allocation6 + $0x88] sm:$0xff]  ;;  %v95_v8 = vld [vmem:[#allocation6 + $0x80] sm:$0xff]  ;;  %v54_v9 = vand.u32 127, %v53_v5  ;;  %v93_v12 = vld [vmem:[#allocation6 + $0x70] sm:$0xff]  ;;  %vm75_vm3 = vcmask 64512   ;;  %vm77_vm4 = vcmask 89088  }
  0x27   :  { %396 = vmatpush3.msra.mxu0 %v80_v4  ;;  %399 = vmatprep.mubr.msk.f32.mxu0 %vm556_vm0, %v554_v1  ;;  %v92_v14 = vld [vmem:[#allocation6 + $0x68] sm:$0xff]  ;;  %v91_v15 = vld [vmem:[#allocation6 + $0x60] sm:$0xff]  ;;  %v90_v17 = vld [vmem:[#allocation6 + $0x58] sm:$0xff]  ;;  %vm120_vm5 = vcmask 130048   ;;  %vm344_vm6 = vcmask 91136  }
  0x28   :  { %397 = vmatprep.subr.mxu0 %v554_v1  ;;  %434 = vmatprep.mubr.msk.f32.mxu1 %vm556_vm0, %v554_v1  ;;  %v89_v19 = vld [vmem:[#allocation6 + $0x50] sm:$0xff]  ;;  %v88_v20 = vld [vmem:[#allocation6 + $0x48] sm:$0xff]  ;;  %v87_v21 = vld [vmem:[#allocation6 + $0x40] sm:$0xff] }
  0x29   :  { %398 = vmatpush3.msra.mxu0 %v79_v6  ;;  %403 = vmatpush3.msra.mxu1 %v96_v7  ;;  %v86_v22 = vld [vmem:[#allocation6 + $0x38] sm:$0xff]  ;;  %v85_v23 = vld [vmem:[#allocation6 + $0x30] sm:$0xff]  ;;  %v84_v24 = vld [vmem:[#allocation6 + $0x28] sm:$0xff] }
  0x2a   :  { %483 = vset.pattern.permute.xlu0 %v555_v3  ;;  %437 = vmatprep.subr.mxu0 %v554_v1  ;;  %v51_v26 = vld [vmem:[#allocation2] sm:$0x3]  ;;  %v83_v30 = vld [vmem:[#allocation6 + $0x20] sm:$0xff]  ;;  %v81_v32 = vld [vmem:[#allocation6 + $0x10] sm:$0xff] }
  0x2b   :  { %62 = vperm.xlu0 %483, %v52_v2   ;;  %404 = vmatprep.subr.mxu1 %v554_v1  ;;  %v82_v31 = vld [vmem:[#allocation6 + $0x18] sm:$0xff]  ;;  %v112_v33 = vld [vmem:[#allocation6 + $0x108] sm:$0xff]  ;;  %v111_v34 = vld [vmem:[#allocation6 + $0x100] sm:$0xff] }
  0x2c   :  { %405 = vmatpush3.msra.mxu1 %v95_v8  ;;  %v110_v35 = vld [vmem:[#allocation6 + $0xf8] sm:$0xff]  ;;  %v109_v36 = vld [vmem:[#allocation6 + $0xf0] sm:$0xff]  ;;  %v108_v37 = vld [vmem:[#allocation6 + $0xe8] sm:$0xff] }
  0x2d   :  { %406 = vmatprep.subr.mxu1 %v554_v1  ;;  %v107_v38 = vld [vmem:[#allocation6 + $0xe0] sm:$0xff]  ;;  %v106_v39 = vld [vmem:[#allocation6 + $0xd8] sm:$0xff]  ;;  %v105_v40 = vld [vmem:[#allocation6 + $0xd0] sm:$0xff] }
  0x2e   :  { %407 = vmatpush3.msra.mxu1 %v94_v10  ;;  %v104_v41 = vld [vmem:[#allocation6 + $0xc8] sm:$0xff]  ;;  %v103_v42 = vld [vmem:[#allocation6 + $0xc0] sm:$0xff]  ;;  %v102_v43 = vld [vmem:[#allocation6 + $0xb8] sm:$0xff] }
  0x2f   :  { %408 = vmatprep.subr.mxu1 %v554_v1  ;;  %v101_v44 = vld [vmem:[#allocation6 + $0xb0] sm:$0xff]  ;;  %v100_v45 = vld [vmem:[#allocation6 + $0xa8] sm:$0xff]  ;;  %v99_v51 = vld [vmem:[#allocation6 + $0xa0] sm:$0xff] }
  0x30   :  { %409 = vmatpush3.msra.mxu1 %v93_v12  ;;  %v354_v46 = vld [vmem:[#allocation6 + $0x110] ss:$0 sm:$0xff]  ;;  %v98_v52 = vld [vmem:[#allocation6 + $0x98] sm:$0xff]  ;;  %v356_v54 = vld [vmem:[#allocation6 + $0x111] ss:$0 sm:$0xff] }
  0x31   :  { %410 = vmatprep.subr.mxu1 %v554_v1  ;;  %v97_v53 = vld [vmem:[#allocation6 + $0x90] sm:$0xff] }
  0x32   :  { %411 = vmatpush3.msra.mxu1 %v92_v14  ;;  %v357_v59 = vld [vmem:[#allocation6 + $0x112] ss:$0 sm:$0xff] }
  0x33   :  { %412 = vmatprep.subr.mxu1 %v554_v1 }
  0x34   :  { %413 = vmatpush3.msra.mxu1 %v91_v15 }
  0x35   :  { %414 = vmatprep.subr.mxu1 %v554_v1 }
  0x36   :  { %415 = vmatpush3.msra.mxu1 %v90_v17 }
  0x37   :  { %416 = vmatprep.subr.mxu1 %v554_v1 }
  0x38   :  { %417 = vmatpush3.msra.mxu1 %v89_v19 }
  0x39   :  { %418 = vmatprep.subr.mxu1 %v554_v1 }
  0x3a   :  { %419 = vmatpush3.msra.mxu1 %v88_v20 }
  0x3b   :  { %420 = vmatprep.subr.mxu1 %v554_v1 }
  0x3c   :  { %421 = vmatpush3.msra.mxu1 %v87_v21 }
  0x3d   :  { %422 = vmatprep.subr.mxu1 %v554_v1 }
  0x3e   :  { %423 = vmatpush3.msra.mxu1 %v86_v22 }
  0x3f   :  { %424 = vmatprep.subr.mxu1 %v554_v1 }
  0x40   :  { %425 = vmatpush3.msra.mxu1 %v85_v23 }
  0x41   :  { %426 = vmatprep.subr.mxu1 %v554_v1 }
  0x42   :  { %427 = vmatpush3.msra.mxu1 %v84_v24 }
  0x43   :  { %428 = vmatprep.subr.mxu1 %v554_v1 }
  0x44   :  { %429 = vmatpush3.msra.mxu1 %v83_v30 }
  0x45   :  { %430 = vmatprep.subr.mxu1 %v554_v1 }
  0x46   :  { %431 = vmatpush3.msra.mxu1 %v82_v31 }
  0x47   :  { %432 = vmatprep.subr.mxu1 %v554_v1 }
  0x48   :  { %433 = vmatpush3.msra.mxu1 %v81_v32 }
  0xa1   :  { %v57_v11 = vpop.permute.xlu0 %56 }
  0xa2   :  { %vm58_vm1 = vcmp.eq.s32.totalorder %v54_v9, %v57_v11 }
  0xa3   :  { %v352_v13 = vsel %vm58_vm1, 1.0, %v554_v1 }
  0xa4   :  { %68 = vrot.lane.b32.xlu1 %v352_v13, %s552_s25 }
  0xa6   :  { %v63_v16 = vpop.permute.xlu0 %62 }
  0xa7   :  { %vm64_vm2 = vcmp.eq.s32.totalorder %v54_v9, %v63_v16 }
  0xa8   :  { %v353_v18 = vsel %vm64_vm2, 1.0, %v554_v1 }
  0xa9   :  { %72 = vrot.lane.b32.xlu1 %v353_v18, %s557_s0 }
 0x116   :  { %v69_v25 = vpop.permute.xlu1 %68 }
 0x117   :  { %v76_v27 = vsel %vm75_vm3, %v51_v26, %v69_v25 }
 0x11b   :  { %v73_v28 = vpop.permute.xlu1 %72 }
 0x11c   :  { %v78_v29 = vsel %vm77_vm4, %v76_v27, %v73_v28 }
 0x11d   :  { %400 = vmatmul.mubr.msk.f32.vlgmr.msra.gmra.mxu0 %vm120_vm5, %v78_v29 }
 0x11e   :  { %469 = vmatprep.mubr.msk.f32.mxu0 %vm556_vm0, %v554_v1  ;;  %438 = vmatpush3.msra.mxu0 %v112_v33 }
 0x11f   :  { %439 = vmatprep.subr.mxu0 %v554_v1 }
 0x120   :  { %440 = vmatpush3.msra.mxu0 %v111_v34 }
 0x121   :  { %441 = vmatprep.subr.mxu0 %v554_v1 }
 0x122   :  { %442 = vmatpush3.msra.mxu0 %v110_v35 }
 0x123   :  { %443 = vmatprep.subr.mxu0 %v554_v1 }
 0x124   :  { %444 = vmatpush3.msra.mxu0 %v109_v36 }
 0x125   :  { %445 = vmatprep.subr.mxu0 %v554_v1 }
 0x126   :  { %446 = vmatpush3.msra.mxu0 %v108_v37 }
 0x127   :  { %447 = vmatprep.subr.mxu0 %v554_v1 }
 0x128   :  { %448 = vmatpush3.msra.mxu0 %v107_v38 }
 0x129   :  { %449 = vmatprep.subr.mxu0 %v554_v1 }
 0x12a   :  { %450 = vmatpush3.msra.mxu0 %v106_v39 }
 0x12b   :  { %451 = vmatprep.subr.mxu0 %v554_v1 }
 0x12c   :  { %452 = vmatpush3.msra.mxu0 %v105_v40 }
 0x12d   :  { %453 = vmatprep.subr.mxu0 %v554_v1 }
 0x12e   :  { %454 = vmatpush3.msra.mxu0 %v104_v41 }
 0x12f   :  { %455 = vmatprep.subr.mxu0 %v554_v1 }
 0x130   :  { %456 = vmatpush3.msra.mxu0 %v103_v42 }
 0x131   :  { %457 = vmatprep.subr.mxu0 %v554_v1 }
 0x132   :  { %458 = vmatpush3.msra.mxu0 %v102_v43 }
 0x133   :  { %459 = vmatprep.subr.mxu0 %v554_v1 }
 0x134   :  { %460 = vmatpush3.msra.mxu0 %v101_v44 }
 0x135   :  { %461 = vmatprep.subr.mxu0 %v554_v1 }
 0x136   :  { %462 = vmatpush3.msra.mxu0 %v100_v45 }
 0x137   :  { %463 = vmatprep.subr.mxu0 %v554_v1 }
 0x138   :  { %464 = vmatpush3.msra.mxu0 %v99_v51 }
 0x139   :  { %465 = vmatprep.subr.mxu0 %v554_v1 }
 0x13a   :  { %466 = vmatpush3.msra.mxu0 %v98_v52 }
 0x13b   :  { %467 = vmatprep.subr.mxu0 %v554_v1 }
 0x13c   :  { %468 = vmatpush3.msra.mxu0 %v97_v53 }
 0x1dd   :  { %v190_v47 = vpop.f32.mrf.mxu0 }
 0x1de   :  { %v191_v48 = vadd.f32 %v354_v46, %v190_v47 }
 0x1df   :  { %v401_v49 = vpop.f32.mrf.mxu0 }
 0x1e0   :  { %v194_v50 = vmax.f32 %v191_v48, 0.0 }
 0x1e2   :  { %435 = vmatmul.mubr.f32.vlgmr.msra.gmra.mxu1 %v194_v50 }
 0x2a2   :  { %v265_v55 = vpop.f32.mrf.mxu1 }
 0x2a3   :  { %v266_v56 = vadd.f32 %v356_v54, %v265_v55 }
 0x2a4   :  { %v436_v57 = vpop.f32.mrf.mxu1 }
 0x2a5   :  { %v269_v58 = vmax.f32 %v266_v56, 0.0 }
 0x2a7   :  { %470 = vmatmul.mubr.f32.vlgmr.msra.gmra.mxu0 %v269_v58 }
 0x367   :  { %v340_v60 = vpop.f32.mrf.mxu0 }
 0x368   :  { %v341_v61 = vadd.f32 %v357_v59, %v340_v60 }
 0x369   :  { %v471_v62 = vpop.f32.mrf.mxu0 }
 0x36a   :  { %345 = vst.msk [vmem:[%s637_s3] sm:$0x3] %vm344_vm6, %v341_v61 }
 0x36b   :  { %350 = vsyncpa [#allocation3], 1 }
 0x36c   :  { %351 = vsyncpa [#allocation5], 1 }

</bundles_post_ra>
